<compile_context>
chip_gen: v7x
topology: tpu7x:2x2x1
jax: 0.10.0
libtpu: 0.0.40
codegen_flags: <defaults>
</compile_context>

<pallas_src>
import functools

import jax
import jax.numpy as jnp
from jax import lax
from jax.experimental import pallas as pl
from jax.experimental.pallas import tpu as pltpu

_EPS = 1e-12       # F.normalize default eps
_MARGIN = 0.1      # margin_ranking_loss margin in the reference module
_NT = (((1,), (1,)), ((), ()))   # contract dim 1 of both operands == A @ B.T without .T


def _normalize_scaled(x, scale):
    """x / max(||x||_2, eps) * scale via rsqrt + one Newton step (f32 accuracy, no divide)."""
    ss = jnp.maximum(jnp.sum(x * x, axis=1, keepdims=True), _EPS * _EPS)
    inv = lax.rsqrt(ss)
    inv = inv * (1.5 - 0.5 * ss * inv * inv)          # Newton refinement of the rsqrt seed
    return x * (inv * scale)                          # sqrt(1/T) folded into the rescale


def _mm_dtype(*refs):
    # bf16 stays strictly an MXU-operand dtype; normalize/exp/LSE/hinge math is f32
    # (v5e VPU/EUP have no bf16 support, so never downcast the elementwise path).
    return jnp.bfloat16 if all(r.dtype == jnp.bfloat16 for r in refs) else jnp.float32


def _base_loss(f1m, f2m):
    """Symmetric InfoNCE.  Operands already carry the sqrt(1/temp) scale.

    Returns (base_loss, pos) where pos is the (B,1) positive-logit column == diag(sim)."""
    sim = lax.dot_general(f1m, f2m, dimension_numbers=_NT,
                          preferred_element_type=jnp.float32)            # (B, B), MXU

    # Positive logits from the same MXU operands (bf16 products are exact in f32, so pos
    # matches diag(sim) up to accumulation order -- review correctness note #2).
    pos = jnp.sum(f1m.astype(jnp.float32) * f2m.astype(jnp.float32),
                  axis=1, keepdims=True)                                 # (B, 1)

    # Row log-sum-exp (per-row max, lane reduce).
    m1 = jnp.max(sim, axis=1, keepdims=True)
    e1 = jnp.exp(sim - m1)
    lse1 = m1 + jnp.log(jnp.sum(e1, axis=1, keepdims=True))              # (B, 1)

    # Column log-sum-exp with a per-column max (robust for any temperature; replaces the
    # global-max reweight flagged in review).  The sublane reduce is fused into an MXU
    # matvec, so no (B,B) weighted temporary and no XLU sublane reduction.
    c = jnp.max(sim, axis=0, keepdims=True)                              # (1, B)
    e2 = jnp.exp(sim - c)
    ones_row = jnp.ones((1, sim.shape[0]), dtype=jnp.float32)
    col_sum = jnp.dot(ones_row, e2, preferred_element_type=jnp.float32)  # (1, B), MXU
    lse2 = c + jnp.log(col_sum)                                          # (1, B)

    base = 0.5 * (jnp.mean(lse1) + jnp.mean(lse2)) - jnp.mean(pos)
    return base, pos


def _contrastive_base_kernel(f1_ref, f2_ref, out_ref, *, scale):
    f1s = _normalize_scaled(f1_ref[...].astype(jnp.float32), scale)
    f2s = _normalize_scaled(f2_ref[...].astype(jnp.float32), scale)
    mm_dt = _mm_dtype(f1_ref, f2_ref)
    base, _ = _base_loss(f1s.astype(mm_dt), f2s.astype(mm_dt))
    out_ref[0] = base                 # scalar -> SMEM: no padded VMEM tile writeback


def _contrastive_hard_kernel(f1_ref, f2_ref, hn_ref, out_ref, *, scale, hard_w):
    f1s = _normalize_scaled(f1_ref[...].astype(jnp.float32), scale)
    f2s = _normalize_scaled(f2_ref[...].astype(jnp.float32), scale)
    hns = _normalize_scaled(hn_ref[...].astype(jnp.float32), scale)

    mm_dt = _mm_dtype(f1_ref, f2_ref, hn_ref)
    f1m = f1s.astype(mm_dt)
    f2m = f2s.astype(mm_dt)
    hnm = hns.astype(mm_dt)

    base, pos = _base_loss(f1m, f2m)

    # Two NT matmuls sharing the same hard-negative RHS (no (2B,D)/(2B,1) sublane concats;
    # the RHS stays MXU-stationary across back-to-back matmuls anyway).
    hs1 = lax.dot_general(f1m, hnm, dimension_numbers=_NT,
                          preferred_element_type=jnp.float32)            # (B, N)
    hs2 = lax.dot_general(f2m, hnm, dimension_numbers=_NT,
                          preferred_element_type=jnp.float32)            # (B, N)
    h1 = jnp.mean(jnp.maximum(0.0, hs1 - pos + _MARGIN))
    h2 = jnp.mean(jnp.maximum(0.0, hs2 - pos + _MARGIN))
    out_ref[0] = base + 0.5 * (h1 + h2) * hard_w


def _vmem_budget(b, d, n, in_itemsize):
    # inputs (+ their f32 normalized copies), 3x (B,B) f32 sim/exp tiles,
    # 2x (B,N) f32 hard-negative sims, plus compiler scratch headroom.
    est = (2 * b + n) * d * (in_itemsize + 4) + 3 * b * b * 4 + 2 * b * n * 4 + (2 << 20)
    # Floor at the 32 MiB default-ish scoped limit; cap at 64 MiB so the whole-array
    # design stays legal on v7x.  TODO(synk): row-tile once the estimate exceeds the cap.
    return int(min(max(est, 32 << 20), 64 << 20))


def contrastive_loss(features_1, features_2, hard_negatives=None,
                     temperature=0.1, hard_negative_weight=1.0):
    """Pallas implementation of ContrastiveLoss.forward (use_dynamic_temp=False)."""
    assert features_1.shape == features_2.shape, "Feature dimensions do not match"
    scale = float(1.0 / temperature) ** 0.5   # sqrt(1/T) folded into every normalized operand

    b, d = features_1.shape
    n = 0 if hard_negatives is None else hard_negatives.shape[0]

    out_shape = jax.ShapeDtypeStruct((1,), jnp.float32)
    vmem = pl.BlockSpec(memory_space=pltpu.MemorySpace.VMEM)
    smem_out = pl.BlockSpec(memory_space=pltpu.MemorySpace.SMEM)
    cparams = pltpu.CompilerParams(
        vmem_limit_bytes=_vmem_budget(b, d, n, features_1.dtype.itemsize))

    if hard_negatives is None:
        kern = functools.partial(_contrastive_base_kernel, scale=scale)
        loss = pl.pallas_call(
            kern, out_shape=out_shape,
            in_specs=[vmem, vmem], out_specs=smem_out,
            compiler_params=cparams,
        )(features_1, features_2)
    else:
        kern = functools.partial(_contrastive_hard_kernel, scale=scale,
                                 hard_w=float(hard_negative_weight))
        loss = pl.pallas_call(
            kern, out_shape=out_shape,
            in_specs=[vmem, vmem, vmem], out_specs=smem_out,
            compiler_params=cparams,
        )(features_1, features_2, hard_negatives)

    return loss[0]


# ------------------------- pure-JAX reference -------------------------
def _reference(f1, f2, hn=None, temperature=0.1, hard_negative_weight=1.0):
    def norm(x):
        nrm = jnp.sqrt(jnp.sum(x * x, axis=1, keepdims=True))
        return x / jnp.maximum(nrm, _EPS)

    f1n = norm(f1.astype(jnp.float32))
    f2n = norm(f2.astype(jnp.float32))
    sim = f1n @ f2n.T / temperature
    b = sim.shape[0]
    labels = jnp.arange(b)
    logp1 = jax.nn.log_softmax(sim, axis=1)
    logp2 = jax.nn.log_softmax(sim.T, axis=1)
    loss1 = -jnp.mean(logp1[jnp.arange(b), labels])
    loss2 = -jnp.mean(logp2[jnp.arange(b), labels])
    base = 0.5 * (loss1 + loss2)
    if hn is None:
        return base
    hnn = norm(hn.astype(jnp.float32))
    hs1 = f1n @ hnn.T / temperature
    hs2 = f2n @ hnn.T / temperature
    pos = jnp.diag(sim)
    hl1 = jnp.mean(jnp.maximum(0.0, -(pos[:, None] - hs1) + _MARGIN))
    hl2 = jnp.mean(jnp.maximum(0.0, -(pos[:, None] - hs2) + _MARGIN))
    return base + 0.5 * (hl1 + hl2) * hard_negative_weight


if __name__ == "__main__":
    key = jax.random.PRNGKey(0)
    k1, k2, k3 = jax.random.split(key, 3)

    batch, dim, n_hard = 8, 32, 8
    features_1 = jax.random.normal(k1, (batch, dim), dtype=jnp.float32)
    features_2 = jax.random.normal(k2, (batch, dim), dtype=jnp.float32)
    hard_negatives = jax.random.normal(k3, (n_hard, dim), dtype=jnp.float32)

    # base loss only
    loss_base = jax.block_until_ready(contrastive_loss(features_1, features_2))
    ref_base = _reference(features_1, features_2)
    assert jnp.allclose(loss_base, ref_base, atol=1e-4, rtol=1e-4), (loss_base, ref_base)

    # with hard negatives
    loss_hard = jax.block_until_ready(
        contrastive_loss(features_1, features_2, hard_negatives))
    ref_hard = _reference(features_1, features_2, hard_negatives)
    assert jnp.allclose(loss_hard, ref_hard, atol=1e-4, rtol=1e-4), (loss_hard, ref_hard)

    print("KERNEL_OK")
</pallas_src>

<mosaic_0001>
module attributes {stable_mosaic.version = 11 : i64} {
  func.func @_contrastive_base_kernel(%arg0: memref<8x32xf32, #tpu.memory_space<vmem>>, %arg1: memref<8x32xf32, #tpu.memory_space<vmem>>, %arg2: memref<1xf32, #tpu.memory_space<smem>>) attributes {dimension_semantics = [], scalar_prefetch = 0 : i64, scratch_operands = 0 : i64, tpu.core_type = #tpu.core_type<tc>} {
    %c0 = arith.constant 0 : index
    %c0_0 = arith.constant 0 : index
    %0 = vector.load %arg0[%c0, %c0_0] : memref<8x32xf32, #tpu.memory_space<vmem>>, vector<8x32xf32>
    %1 = arith.mulf %0, %0 : vector<8x32xf32>
    %cst = arith.constant dense<0.000000e+00> : vector<8xf32>
    %2 = vector.multi_reduction <add>, %1, %cst [1] : vector<8x32xf32> to vector<8xf32>
    %3 = vector.shape_cast %2 : vector<8xf32> to vector<8x1xf32>
    %cst_1 = arith.constant 1.000000e-24 : f32
    %4 = vector.broadcast %cst_1 : f32 to vector<8x1xf32>
    %5 = arith.maximumf %3, %4 : vector<8x1xf32>
    %6 = math.rsqrt %5 : vector<8x1xf32>
    %cst_2 = arith.constant 5.000000e-01 : f32
    %7 = vector.broadcast %cst_2 : f32 to vector<8x1xf32>
    %8 = arith.mulf %7, %5 : vector<8x1xf32>
    %9 = arith.mulf %8, %6 : vector<8x1xf32>
    %10 = arith.mulf %9, %6 : vector<8x1xf32>
    %cst_3 = arith.constant 1.500000e+00 : f32
    %11 = vector.broadcast %cst_3 : f32 to vector<8x1xf32>
    %12 = arith.subf %11, %10 : vector<8x1xf32>
    %13 = arith.mulf %6, %12 : vector<8x1xf32>
    %cst_4 = arith.constant 3.1622777 : f32
    %14 = vector.broadcast %cst_4 : f32 to vector<8x1xf32>
    %15 = arith.mulf %13, %14 : vector<8x1xf32>
    %16 = vector.broadcast %15 : vector<8x1xf32> to vector<8x32xf32>
    %17 = arith.mulf %0, %16 : vector<8x32xf32>
    %c0_5 = arith.constant 0 : index
    %c0_6 = arith.constant 0 : index
    %18 = vector.load %arg1[%c0_5, %c0_6] : memref<8x32xf32, #tpu.memory_space<vmem>>, vector<8x32xf32>
    %19 = arith.mulf %18, %18 : vector<8x32xf32>
    %cst_7 = arith.constant dense<0.000000e+00> : vector<8xf32>
    %20 = vector.multi_reduction <add>, %19, %cst_7 [1] : vector<8x32xf32> to vector<8xf32>
    %21 = vector.shape_cast %20 : vector<8xf32> to vector<8x1xf32>
    %cst_8 = arith.constant 1.000000e-24 : f32
    %22 = vector.broadcast %cst_8 : f32 to vector<8x1xf32>
    %23 = arith.maximumf %21, %22 : vector<8x1xf32>
    %24 = math.rsqrt %23 : vector<8x1xf32>
    %cst_9 = arith.constant 5.000000e-01 : f32
    %25 = vector.broadcast %cst_9 : f32 to vector<8x1xf32>
    %26 = arith.mulf %25, %23 : vector<8x1xf32>
    %27 = arith.mulf %26, %24 : vector<8x1xf32>
    %28 = arith.mulf %27, %24 : vector<8x1xf32>
    %cst_10 = arith.constant 1.500000e+00 : f32
    %29 = vector.broadcast %cst_10 : f32 to vector<8x1xf32>
    %30 = arith.subf %29, %28 : vector<8x1xf32>
    %31 = arith.mulf %24, %30 : vector<8x1xf32>
    %cst_11 = arith.constant 3.1622777 : f32
    %32 = vector.broadcast %cst_11 : f32 to vector<8x1xf32>
    %33 = arith.mulf %31, %32 : vector<8x1xf32>
    %34 = vector.broadcast %33 : vector<8x1xf32> to vector<8x32xf32>
    %35 = arith.mulf %18, %34 : vector<8x32xf32>
    %cst_12 = arith.constant dense<0.000000e+00> : vector<8x8xf32>
    %36 = tpu.matmul %17, %35, %cst_12 {dimension_numbers = #tpu.dot_dimension_numbers<[1], [1], [0], [0], [0, 0, 1, 0], [], []>} : vector<8x32xf32>, vector<8x32xf32>, vector<8x8xf32> -> vector<8x8xf32>
    %37 = arith.mulf %17, %35 : vector<8x32xf32>
    %cst_13 = arith.constant dense<0.000000e+00> : vector<8xf32>
    %38 = vector.multi_reduction <add>, %37, %cst_13 [1] : vector<8x32xf32> to vector<8xf32>
    %39 = vector.shape_cast %38 : vector<8xf32> to vector<8x1xf32>
    %cst_14 = arith.constant dense<0xFF800000> : vector<8xf32>
    %40 = vector.multi_reduction <maximumf>, %36, %cst_14 [1] : vector<8x8xf32> to vector<8xf32>
    %41 = vector.shape_cast %40 : vector<8xf32> to vector<8x1xf32>
    %42 = vector.broadcast %41 : vector<8x1xf32> to vector<8x8xf32>
    %43 = arith.subf %36, %42 : vector<8x8xf32>
    %44 = math.exp %43 : vector<8x8xf32>
    %cst_15 = arith.constant dense<0.000000e+00> : vector<8xf32>
    %45 = vector.multi_reduction <add>, %44, %cst_15 [1] : vector<8x8xf32> to vector<8xf32>
    %46 = vector.shape_cast %45 : vector<8xf32> to vector<8x1xf32>
    %47 = math.log %46 : vector<8x1xf32>
    %48 = arith.addf %41, %47 : vector<8x1xf32>
    %cst_16 = arith.constant dense<0xFF800000> : vector<8xf32>
    %49 = vector.multi_reduction <maximumf>, %36, %cst_16 [0] : vector<8x8xf32> to vector<8xf32>
    %50 = vector.shape_cast %49 : vector<8xf32> to vector<1x8xf32>
    %51 = vector.broadcast %50 : vector<1x8xf32> to vector<8x8xf32>
    %52 = arith.subf %36, %51 : vector<8x8xf32>
    %53 = math.exp %52 : vector<8x8xf32>
    %cst_17 = arith.constant 1.000000e+00 : f32
    %54 = vector.broadcast %cst_17 : f32 to vector<1x8xf32>
    %cst_18 = arith.constant dense<0.000000e+00> : vector<1x8xf32>
    %55 = tpu.matmul %54, %53, %cst_18 {dimension_numbers = #tpu.dot_dimension_numbers<[1], [0], [0], [1], [0, 0, 1, 1], [], []>} : vector<1x8xf32>, vector<8x8xf32>, vector<1x8xf32> -> vector<1x8xf32>
    %56 = math.log %55 : vector<1x8xf32>
    %57 = arith.addf %50, %56 : vector<1x8xf32>
    %58 = vector.shape_cast %48 : vector<8x1xf32> to vector<1x8x1xf32>
    %cst_19 = arith.constant dense<0.000000e+00> : vector<1xf32>
    %59 = vector.multi_reduction <add>, %58, %cst_19 [1, 2] : vector<1x8x1xf32> to vector<1xf32>
    %60 = vector.shape_cast %59 : vector<1xf32> to vector<1x1x1xf32>
    %61 = vector.extract %60[0, 0, 0] : f32 from vector<1x1x1xf32>
    %cst_20 = arith.constant 8.000000e+00 : f32
    %62 = arith.divf %61, %cst_20 : f32
    %63 = vector.shape_cast %57 : vector<1x8xf32> to vector<1x1x8xf32>
    %cst_21 = arith.constant dense<0.000000e+00> : vector<1xf32>
    %64 = vector.multi_reduction <add>, %63, %cst_21 [1, 2] : vector<1x1x8xf32> to vector<1xf32>
    %65 = vector.shape_cast %64 : vector<1xf32> to vector<1x1x1xf32>
    %66 = vector.extract %65[0, 0, 0] : f32 from vector<1x1x1xf32>
    %cst_22 = arith.constant 8.000000e+00 : f32
    %67 = arith.divf %66, %cst_22 : f32
    %68 = arith.addf %62, %67 : f32
    %cst_23 = arith.constant 5.000000e-01 : f32
    %69 = arith.mulf %cst_23, %68 : f32
    %70 = vector.shape_cast %39 : vector<8x1xf32> to vector<1x8x1xf32>
    %cst_24 = arith.constant dense<0.000000e+00> : vector<1xf32>
    %71 = vector.multi_reduction <add>, %70, %cst_24 [1, 2] : vector<1x8x1xf32> to vector<1xf32>
    %72 = vector.shape_cast %71 : vector<1xf32> to vector<1x1x1xf32>
    %73 = vector.extract %72[0, 0, 0] : f32 from vector<1x1x1xf32>
    %cst_25 = arith.constant 8.000000e+00 : f32
    %74 = arith.divf %73, %cst_25 : f32
    %75 = arith.subf %69, %74 : f32
    %c0_26 = arith.constant 0 : index
    %76 = memref.load %arg2[%c0_26] : memref<1xf32, #tpu.memory_space<smem>>
    memref.store %75, %arg2[%c0_26] : memref<1xf32, #tpu.memory_space<smem>>
    return
  }
}

</mosaic_0001>

<bundles_post_ra>
// kernel: tpu_custom_call.1
= control target key start
LH: loop header
LB: loop body
LE: loop exit
PB: predicated region body
PF: predicated region fallthrough
CT: control target
= control target key end

     0   :  { %7 = vsyncpa [#allocation3], 0  ;;  %s470_s0 = inlined_call_operand.hbm [shape: f32[8,32], index: 0, kind: input, shape index: {}]   ;;  %s471_s1 = inlined_call_operand.hbm [shape: f32[8,32], index: 1, kind: input, shape index: {}]   ;;  %s472_s2 = inlined_call_operand.hbm [shape: f32[1], index: 2, kind: output, shape index: {}]  }
   0x1   :  { %8 = vsyncpa [#allocation6], 0 }
   0x2   :  { %9 = vsyncpa [#allocation4], 0  ;;  %s405_s9 = smov [#allocation2]   ;;  %s406_s11 = smov [#allocation5]  }
   0x3   :  { %s16_s10 = sshll.u32 %s405_s9, 4  ;;  %s26_s12 = sshll.u32 %s406_s11, 4  ;;  %s17_s10 = int_to_ptr.vmem [resolvable:$true] %s16_s10  ;;  %s27_s12 = int_to_ptr.vmem [resolvable:$true] %s26_s12 }
   0x4   :  { %s345_s15 = scalar_lea.hbm %s470_s0, 128 }
   0x5   :  { %p346_p0 = scmp.ne.s32.totalorder %s470_s0, %s345_s15  ;;  %p349_p1 = scmp.lt.u32.totalorder %s345_s15, %s470_s0 }
   0x7   :  { %p351_p2 = pnand %p349_p1, %p346_p0 }
   0x9   :  { %354 = shalt.err (!%p351_p2)
}
   0xa   :  { %s355_s20 = scalar_lea.vmem %s17_s10, 128  ;;  %p360_p4 = scmp.lt.s32.totalorder %s17_s10, %s17_s10 }
   0xb   :  { %p356_p3 = scmp.ne.s32.totalorder %s17_s10, %s355_s20  ;;  %p361_p5 = scmp.lt.s32.totalorder %s355_s20, %s355_s20 }
   0xd   :  { %p362_p6 = por %p361_p5, %p360_p4 }
   0xf   :  { %p363_p7 = pnand %p362_p6, %p356_p3 }
  0x11   :  { %366 = shalt.err (!%p363_p7)
}
  0x12   :  { %19 = dma.hbm_to_vmem [thread:$0]  %s470_s0, 128, %s17_s10, [#allocation3]  }
  0x13   :  { %s367_s25 = scalar_lea.hbm %s471_s1, 128 }
  0x14   :  { %p368_p8 = scmp.ne.s32.totalorder %s471_s1, %s367_s25  ;;  %p371_p9 = scmp.lt.u32.totalorder %s367_s25, %s471_s1 }
  0x16   :  { %p373_p10 = pnand %p371_p9, %p368_p8 }
  0x18   :  { %376 = shalt.err (!%p373_p10)
}
  0x19   :  { %s377_s30 = scalar_lea.vmem %s27_s12, 128  ;;  %p382_p12 = scmp.lt.s32.totalorder %s27_s12, %s27_s12 }
  0x1a   :  { %p378_p11 = scmp.ne.s32.totalorder %s27_s12, %s377_s30  ;;  %p383_p13 = scmp.lt.s32.totalorder %s377_s30, %s377_s30 }
  0x1c   :  { %p384_p0 = por %p383_p13, %p382_p12 }
  0x1e   :  { %p385_p1 = pnand %p384_p0, %p378_p11 }
  0x20   :  { %388 = shalt.err (!%p385_p1)
}
  0x21   :  { %29 = dma.hbm_to_vmem [thread:$0]  %s471_s1, 128, %s27_s12, [#allocation6]  }
  0x22   :  { %399 = dma.done.wait [#allocation3], 128  }
  0x23   :  { %400 = vsyncadd [#allocation3], 4294967168 }
  0x24   :  { %401 = dma.done.wait [#allocation6], 128  }
  0x25   :  { %402 = vsyncadd [#allocation6], 4294967168  ;;  %vm38_vm0 = vcmask 261120   ;;  %v51_v0 = vld [vmem:[#allocation5] sm:$0xff]  ;;  %v36_v1 = vld [vmem:[#allocation2] sm:$0xff]  ;;  %v407_v6 = vmov 0.0  }
  0x26   :  { %v52_v2 = vmul.f32 %v51_v0, %v51_v0  ;;  %v37_v3 = vmul.f32 %v36_v1, %v36_v1  ;;  %311 = vmatprep.subr.mxu0 %v407_v6  ;;  %316 = vmatprep.subr.mxu1 %v407_v6  ;;  %vm408_vm1 = vmmov 0   ;;  %vm145_vm2 = vcmask 64512   ;;  %s389_s14 = scalar_lea.hbm %s472_s2, 16 }
  0x27   :  { %313 = vmatprep.mubr.msk.f32.mxu0 %vm408_vm1, %v407_v6  ;;  %318 = vmatprep.mubr.msk.f32.mxu1 %vm408_vm1, %v407_v6  ;;  %v409_v41 = vmov 1.0   ;;  %vm257_vm3 = vcmask 57344   ;;  %vm243_vm4 = vcmask 7168   ;;  %p390_p2 = scmp.ne.s32.totalorder %s472_s2, %s389_s14  ;;  %p393_p3 = scmp.lt.u32.totalorder %s389_s14, %s472_s2 }
  0x28   :  { %v53_v4 = vsel %vm38_vm0, %v52_v2, 0.0  ;;  %v39_v5 = vsel %vm38_vm0, %v37_v3, 0.0 }
  0x29   :  { %54 = vadd.xlane.f32.xlu0 %v53_v4  ;;  %p395_p4 = pnand %p393_p3, %p390_p2 }
  0x2d   :  { %40 = vadd.xlane.f32.xlu0 %v39_v5 }
  0xb6   :  { %v55_v7 = vpop.xlane.xlu0 %54 }
  0xb7   :  { %v56_v8 = vmax.f32 %v55_v7, 1e-24 }
  0xb9   :  { %333 = vrsqrt.f32 %v56_v8  ;;  %v58_v11 = vmul.f32 0.5, %v56_v8 }
  0xba   :  { %v41_v9 = vpop.xlane.xlu0 %40 }
  0xbb   :  { %v42_v10 = vmax.f32 %v41_v9, 1e-24 }
  0xbd   :  { %335 = vrsqrt.f32 %v42_v10  ;;  %v44_v15 = vmul.f32 0.5, %v42_v10 }
  0xc3   :  { %v334_v12 = vpop.eup %333 }
  0xc4   :  { %v59_v13 = vmul.f32 %v334_v12, %v58_v11 }
  0xc6   :  { %v60_v14 = vmul.f32 %v334_v12, %v59_v13 }
  0xc7   :  { %v336_v16 = vpop.eup %335 }
  0xc8   :  { %v61_v17 = vsub.f32 1.5, %v60_v14  ;;  %v45_v18 = vmul.f32 %v336_v16, %v44_v15 }
  0xca   :  { %v46_v19 = vmul.f32 %v336_v16, %v45_v18  ;;  %v62_v20 = vmul.f32 %v334_v12, %v61_v17 }
  0xcc   :  { %v47_v21 = vsub.f32 1.5, %v46_v19  ;;  %v63_v22 = vmul.f32 3.1622777, %v62_v20 }
  0xce   :  { %v48_v23 = vmul.f32 %v336_v16, %v47_v21  ;;  %v64_v24 = vmul.f32 %v63_v22, %v51_v0 }
  0xd0   :  { %312 = vmatpush3.xpose.msk.msra.mxu0 %vm38_vm0, %v64_v24  ;;  %v49_v25 = vmul.f32 3.1622777, %v48_v23 }
  0xd2   :  { %v50_v26 = vmul.f32 %v49_v25, %v36_v1 }
  0xd4   :  { %314 = vmatmul.mubr.msk.f32.vlgmr.msra.gmra.mrb[0].mxu0 %vm38_vm0, %v50_v26  ;;  %v141_v27 = vmul.f32 %v64_v24, %v50_v26 }
  0xd6   :  { %v142_v28 = vsel %vm38_vm0, %v141_v27, 0.0 }
  0xd7   :  { %143 = vadd.xlane.f32.xlu0 %v142_v28 }
 0x164   :  { %v144_v58 = vpop.xlane.xlu0 %143 }
 0x165   :  { %v273_v59 = vsel %vm243_vm4, %v144_v58, 0.0 }
 0x1a7   :  { %v137_v29 = vpop.f32.mrb[0].mxu0 }
 0x1a8   :  { %v315_v30 = vpop.f32.mrb[1].mxu0  ;;  %v146_v31 = vsel %vm145_vm2, %v137_v29, -inf }
 0x1a9   :  { %147 = vmax.xlane.f32.xlu1 %v146_v31  ;;  %v158_v32 = vrot.slane %v146_v31, 4 }
 0x1ab   :  { %v159_v33 = vmax.f32 %v146_v31, %v158_v32 }
 0x1ad   :  { %v160_v34 = vrot.slane %v159_v33, 2 }
 0x1af   :  { %v161_v35 = vmax.f32 %v159_v33, %v160_v34 }
 0x1b1   :  { %v162_v36 = vrot.slane %v161_v35, 1 }
 0x1b3   :  { %v163_v37 = vmax.f32 %v161_v35, %v162_v36 }
 0x1b5   :  { %v164_v38 = vsub.f32 %v137_v29, %v163_v37 }
 0x1b7   :  { %v165_v39 = vmul.f32 1.442695, %v164_v38 }
 0x1b9   :  { %337 = vpow2.f32 %v165_v39 }
 0x1c3   :  { %v338_v40 = vpop.eup %337 }
 0x1c4   :  { %317 = vmatpush3.msra.mxu1 %v338_v40 }
 0x1c5   :  { %319 = vmatmul.mubr.msk.f32.vlgmr.msra.gmra.mrb[0].mxu1 %vm145_vm2, %v409_v41 }
 0x236   :  { %v148_v42 = vpop.xlane.xlu1 %147 }
 0x237   :  { %v149_v43 = vsub.f32 %v137_v29, %v148_v42 }
 0x239   :  { %v150_v44 = vmul.f32 1.442695, %v149_v43 }
 0x23b   :  { %339 = vpow2.f32 %v150_v44 }
 0x245   :  { %v340_v45 = vpop.eup %339 }
 0x246   :  { %v152_v46 = vsel %vm145_vm2, %v340_v45, 0.0 }
 0x247   :  { %153 = vadd.xlane.f32.xlu1 %v152_v46 }
 0x298   :  { %v236_v47 = vpop.f32.mrb[0].mxu1 }
 0x299   :  { %341 = vlog2.f32 %v236_v47  ;;  %v320_v48 = vpop.f32.mrb[1].mxu1 }
 0x2a3   :  { %v342_v49 = vpop.eup %341 }
 0x2a4   :  { %v241_v50 = vmul.f32 0.6931472, %v342_v49 }
 0x2a6   :  { %v242_v51 = vadd.f32 %v241_v50, %v163_v37 }
 0x2a8   :  { %v258_v52 = vsel %vm257_vm3, %v242_v51, 0.0 }
 0x2a9   :  { %259 = vadd.xlane.f32.xlu0 %v258_v52 }
 0x2d4   :  { %v154_v53 = vpop.xlane.xlu1 %153 }
 0x2d5   :  { %343 = vlog2.f32 %v154_v53 }
 0x2df   :  { %v344_v54 = vpop.eup %343 }
 0x2e0   :  { %v156_v55 = vmul.f32 0.6931472, %v344_v54 }
 0x2e2   :  { %v157_v56 = vadd.f32 %v156_v55, %v148_v42 }
 0x2e4   :  { %v244_v57 = vsel %vm243_vm4, %v157_v56, 0.0 }
 0x2e5   :  { %245 = vadd.xlane.f32.xlu1 %v244_v57 }
 0x2e9   :  { %274 = vadd.xlane.f32.xlu1 %v273_v59 }
 0x336   :  { %v260_v60 = vpop.xlane.xlu0 %259 }
 0x337   :  { %v261_v61 = vrot.slane %v260_v60, 4 }
 0x339   :  { %v262_v62 = vadd.f32 %v261_v61, %v260_v60 }
 0x33b   :  { %v263_v63 = vrot.slane %v262_v62, 2 }
 0x33d   :  { %v264_v3 = vadd.f32 %v263_v63, %v262_v62 }
 0x33f   :  { %v265_v9 = vrot.slane %v264_v3, 1 }
 0x341   :  { %v266_v14 = vadd.f32 %v265_v9, %v264_v3 }
 0x372   :  { %v246_v0 = vpop.xlane.xlu1 %245 }
 0x373   :  { %v247_v1 = vrot.slane %v246_v0, 4 }
 0x375   :  { %v248_v2 = vadd.f32 %v247_v1, %v246_v0 }
 0x376   :  { %v275_v4 = vpop.xlane.xlu1 %274 }
 0x377   :  { %v249_v5 = vrot.slane %v248_v2, 2  ;;  %v276_v6 = vrot.slane %v275_v4, 4 }
 0x379   :  { %v277_v7 = vadd.f32 %v276_v6, %v275_v4  ;;  %v250_v8 = vadd.f32 %v249_v5, %v248_v2 }
 0x37b   :  { %v278_v10 = vrot.slane %v277_v7, 2  ;;  %v251_v11 = vrot.slane %v250_v8, 1 }
 0x37d   :  { %v279_v12 = vadd.f32 %v278_v10, %v277_v7  ;;  %v252_v13 = vadd.f32 %v251_v11, %v250_v8 }
 0x37f   :  { %321 = vpush %v252_v13  ;;  %v280_v15 = vrot.slane %v279_v12, 1 }
 0x380   :  { %323 = vpush %v266_v14 }
 0x381   :  { %v281_v16 = vadd.f32 %v280_v15, %v279_v12 }
 0x383   :  { %325 = vpush %v281_v16 }
 0x3b0   :  { %s322_s1 = spop %321 }
 0x3b1   :  { %s256_s4 = smul.f32 0.125, %s322_s1  ;;  %s324_s5 = spop %323 }
 0x3b2   :  { %s270_s6 = smul.f32 0.125, %s324_s5 }
 0x3b4   :  { %s271_s7 = sadd.f32 %s270_s6, %s256_s4  ;;  %s326_s8 = spop %325 }
 0x3b5   :  { %s285_s9 = smul.f32 0.125, %s326_s8 }
 0x3b6   :  { %s272_s10 = smul.f32 0.5, %s271_s7 }
 0x3b8   :  { %s286_s11 = ssub.f32 %s272_s10, %s285_s9 }
 0x3ba   :  { %288 = sst [smem:[#allocation7]] %s286_s11 }
 0x3bb   :  { %398 = shalt.err (!%p395_p4)
}
 0x3bc   :  { %s410_s19 = smov [#allocation7]  }
 0x3bd   :  { %296 = dma.smem_to_hbm %s410_s19, 16, %s472_s2, [#allocation4]  }
 0x3be   :  { %403 = dma.done.wait [#allocation4], 16  }
 0x3bf   :  { %404 = vsyncadd [#allocation4], 4294967280 }
 0x3c0   :  { %300 = sfence }
 0x3c1   :  { %301 = vsyncpa [#allocation3], 1 }
 0x3c2   :  { %302 = vsyncpa [#allocation6], 1 }
 0x3c3   :  { %303 = vsyncpa [#allocation4], 1 }

</bundles_post_ra>
